<compile_context>
chip_gen: v5e
topology: v5e:2x2
jax: 0.10.0
libtpu: 0.0.40
codegen_flags: <defaults>
</compile_context>

<pallas_src>
import functools

import jax
import jax.numpy as jnp
from jax import lax
from jax.experimental import pallas as pl
from jax.experimental.pallas import tpu as pltpu


# --------------------------------------------------------------------------- #
# Stage 1: mean(x) over (batch, seq)  ->  arch_code, b_eff                    #
# --------------------------------------------------------------------------- #

def _arch_beff_kernel(x_ref, agwT_ref, agb_ref, bmwT_ref, bmb_ref, bb_ref,
                      arch_ref, beff_ref, sum_ref, *, n_rows, c_base, c_new):
    n = pl.program_id(0)
    tm = x_ref.shape[0]

    @pl.when(n == 0)
    def _():
        sum_ref[...] = jnp.zeros_like(sum_ref)

    # The last tile of a cdiv grid reads past the end of x2d (garbage rows);
    # mask them before accumulating the column sums.
    row = n * tm + lax.broadcasted_iota(jnp.int32, x_ref.shape, 0)
    xv = jnp.where(row < n_rows, x_ref[...], 0.0)
    sum_ref[...] += jnp.sum(xv, axis=0, keepdims=True)

    @pl.when(n == pl.num_programs(0) - 1)
    def _():
        xm = sum_ref[...] * (1.0 / n_rows)                               # (1, H)
        arch = jnp.dot(xm, agwT_ref[...],
                       preferred_element_type=jnp.float32) + agb_ref[...]
        arch_ref[...] = arch                                             # (1, 1024)
        new_b = jnp.dot(arch, bmwT_ref[...],
                        preferred_element_type=jnp.float32) + bmb_ref[...]
        beff_ref[...] = c_base * bb_ref[...] + c_new * new_b             # (1, H)


def pallas_arch_and_beff(kp, x2d, meta_lr, *, tm_max=256):
    M, H = x2d.shape
    tm = M if M <= tm_max else tm_max              # tm_max is a multiple of 8
    c_base = 0.8 + 0.2 * (1.0 - meta_lr)
    c_new = 0.2 * meta_lr
    kernel = functools.partial(_arch_beff_kernel, n_rows=M,
                               c_base=c_base, c_new=c_new)
    arch, beff = pl.pallas_call(
        kernel,
        out_shape=(jax.ShapeDtypeStruct((1, 1024), jnp.float32),
                   jax.ShapeDtypeStruct((1, H), jnp.float32)),
        grid=(pl.cdiv(M, tm),),
        in_specs=[
            pl.BlockSpec((tm, H), lambda n: (n, 0)),        # x2d streamed over M
            pl.BlockSpec((H, 1024), lambda n: (0, 0)),      # ag_wT (in, out), resident
            pl.BlockSpec((1, 1024), lambda n: (0, 0)),      # ag_b
            pl.BlockSpec((1024, H), lambda n: (0, 0)),      # bm_wT (in, out), resident
            pl.BlockSpec((1, H), lambda n: (0, 0)),         # bm_b
            pl.BlockSpec((1, H), lambda n: (0, 0)),         # base_b
        ],
        out_specs=(pl.BlockSpec((1, 1024), lambda n: (0, 0)),
                   pl.BlockSpec((1, H), lambda n: (0, 0))),
        scratch_shapes=[pltpu.VMEM((1, H), jnp.float32)],   # running column sum
        compiler_params=pltpu.CompilerParams(
            dimension_semantics=("arbitrary",),              # carried sum scratch
            vmem_limit_bytes=32 << 20),
    )(x2d, kp["ag_wT"], kp["ag_b"], kp["bm_wT"], kp["bm_b"], kp["base_b"])
    return arch, beff


# --------------------------------------------------------------------------- #
# Stage 2: stream wm_w over the H*H columns, fuse the blend epilogue          #
# --------------------------------------------------------------------------- #

def _weff_stream_kernel(arch_ref, wmwT_ref, wmb_ref, bwf_ref, weff_ref,
                        *, c_base, c_new):
    # Native (1,0) contraction on pre-transposed bf16 wm_wT: no XLU relayout,
    # MXU accumulates in f32; blend epilogue stays in f32.
    new_w = jnp.dot(arch_ref[...].astype(wmwT_ref.dtype), wmwT_ref[...],
                    preferred_element_type=jnp.float32) + wmb_ref[...]
    weff_ref[...] = c_base * bwf_ref[...] + c_new * new_w


def _gen_stream_budget():
    """(max lane-tile TN, vmem_limit_bytes) per chip generation."""
    try:
        vmem = int(pltpu.get_tpu_info().vmem_capacity_bytes)
    except Exception:
        vmem = 64 << 20                        # be conservative (v7x-class)
    if vmem >= (100 << 20):                    # v5e / v6e: 128 MiB physical VMEM
        return 8192, 64 << 20                  # 16 MiB bf16 tile, double-buffered
    return 4096, 40 << 20                      # v7x: 64 MiB physical VMEM


def pallas_effective_weight(kp, arch, meta_lr):
    HH = kp["wm_wT"].shape[1]
    max_tn, vmem_limit = _gen_stream_budget()
    tn = HH if HH <= max_tn else max_tn        # max_tn is a multiple of 128;
    c_base = 0.8 + 0.2 * (1.0 - meta_lr)       # cdiv grid handles a ragged tail
    c_new = 0.2 * meta_lr                      # (OOB writes are masked).
    kernel = functools.partial(_weff_stream_kernel, c_base=c_base, c_new=c_new)
    # NOTE: if a trace shows exposed DMA at tile boundaries, bump the wm_wT spec
    # to pipeline_mode=pl.Buffered(3) where the per-generation VMEM budget allows.
    return pl.pallas_call(
        kernel,
        out_shape=jax.ShapeDtypeStruct((1, HH), jnp.float32),
        grid=(pl.cdiv(HH, tn),),
        in_specs=[
            pl.BlockSpec((1, 1024), lambda n: (0, 0)),       # arch (resident)
            pl.BlockSpec((1024, tn), lambda n: (0, n)),      # wm_wT bf16 stream
            pl.BlockSpec((1, tn), lambda n: (0, n)),         # wm_b
            pl.BlockSpec((1, tn), lambda n: (0, n)),         # base_w (flat, f32)
        ],
        out_specs=pl.BlockSpec((1, tn), lambda n: (0, n)),   # lane-dense W_eff
        compiler_params=pltpu.CompilerParams(
            dimension_semantics=("parallel",),               # no carried state ->
            vmem_limit_bytes=vmem_limit),                    # megacore-shardable
    )(arch, kp["wm_wT"], kp["wm_b"], kp["base_w_flat"])


# --------------------------------------------------------------------------- #
# Hot path: out = x @ W^T + b, M-tiled, weight resident in (in, out) layout   #
# --------------------------------------------------------------------------- #

def _linear_kernel(x_ref, wT_ref, b_ref, o_ref):
    o_ref[...] = (jnp.dot(x_ref[...], wT_ref[...],
                          preferred_element_type=jnp.float32) + b_ref[...])


def pallas_linear(x2d, wT, b, *, tm_max=256):
    """y = x2d @ wT + b with wT already in (in, out) layout (native contraction)."""
    M, K = x2d.shape
    N = wT.shape[1]
    tm = M if M <= tm_max else tm_max
    # The K (hidden) axis stays untiled: the (K, N) weight is resident. Add an
    # "arbitrary" K grid axis only if hidden_size grows beyond the VMEM budget.
    return pl.pallas_call(
        _linear_kernel,
        out_shape=jax.ShapeDtypeStruct((M, N), jnp.float32),
        grid=(pl.cdiv(M, tm),),
        in_specs=[
            pl.BlockSpec((tm, K), lambda m: (m, 0)),   # x rows streamed
            pl.BlockSpec((K, N), lambda m: (0, 0)),    # weight resident
            pl.BlockSpec((1, N), lambda m: (0, 0)),    # bias resident
        ],
        out_specs=pl.BlockSpec((tm, N), lambda m: (m, 0)),
        compiler_params=pltpu.CompilerParams(
            dimension_semantics=("parallel",),         # independent row tiles
            vmem_limit_bytes=32 << 20),
    )(x2d, wT, b)


# --------------------------------------------------------------------------- #
# Parameters (PyTorch layout for the reference) + one-time kernel layout      #
# --------------------------------------------------------------------------- #

def init_params(key, hidden_size):
    """Deterministic PyTorch-nn.Linear-style init (uniform +-1/sqrt(fan_in))."""
    def linear_init(k, out_f, in_f):
        kw, kb = jax.random.split(k)
        bound = float(in_f) ** -0.5
        w = jax.random.uniform(kw, (out_f, in_f), jnp.float32, -bound, bound)
        b = jax.random.uniform(kb, (out_f,), jnp.float32, -bound, bound)
        return w, b

    k0, k1, k2, k3 = jax.random.split(key, 4)
    H = hidden_size
    base_w, base_b = linear_init(k0, H, H)                  # base_transform
    ag_w, ag_b = linear_init(k1, 1024, H)                   # architecture_generator
    wm_w, wm_b = linear_init(k2, H * H, 1024)               # weight_modifier
    bm_w, bm_b = linear_init(k3, H, 1024)                   # bias_modifier
    return dict(base_w=base_w, base_b=base_b, ag_w=ag_w, ag_b=ag_b,
                wm_w=wm_w, wm_b=wm_b, bm_w=bm_w, bm_b=bm_b)


def prepare_kernel_params(params):
    """One-time layout change (would live at module init in real use):
    weights pre-transposed to (in, out) so every in-kernel dot is the native
    (1,0) contraction; wm_w additionally stored bf16 (halves the dominant HBM
    stream; its contribution to W_eff is scaled by 0.2*meta_lr, so the precision
    loss is far below f32 rounding of the c_base*base_w term); biases as (1, N)
    lane-dense rows; base_w also kept flat in f32 for the blend epilogue."""
    H = params["base_w"].shape[0]
    return dict(
        base_wT=jnp.asarray(params["base_w"].T),                    # (H, H) f32
        base_w_flat=params["base_w"].reshape(1, H * H),             # (1, H*H) f32
        base_b=params["base_b"].reshape(1, H),
        ag_wT=jnp.asarray(params["ag_w"].T),                        # (H, 1024) f32
        ag_b=params["ag_b"].reshape(1, 1024),
        wm_wT=jnp.asarray(params["wm_w"].T).astype(jnp.bfloat16),   # (1024, H*H)
        wm_b=params["wm_b"].reshape(1, H * H),
        bm_wT=jnp.asarray(params["bm_w"].T),                        # (1024, H) f32
        bm_b=params["bm_b"].reshape(1, H),
    )


# --------------------------------------------------------------------------- #
# Module forward                                                              #
# --------------------------------------------------------------------------- #

def self_modifying_layer_forward(kp, x, step=0, *, self_modification=True,
                                 meta_lr=1e-6):
    # NOTE: `step > 100` is a Python-level branch, exactly as in the module.
    B, S, H = x.shape
    x2d = x.reshape(B * S, H)

    if self_modification and step > 100:
        arch, b_eff = pallas_arch_and_beff(kp, x2d, meta_lr)     # stage 1 (small)
        w_eff_flat = pallas_effective_weight(kp, arch, meta_lr)  # stage 2 (stream)
        # One tiny (H, H) transpose so the hot-path matmul uses the native
        # (in, out) contraction: 2*H^2*4 B of traffic vs the ~H^2*1024*2 B wm_w
        # stream above (~0.2%).  Unlike static weights, W_eff is per-call, so it
        # cannot be pre-transposed at init.
        w_effT = w_eff_flat.reshape(H, H).T
        out2d = pallas_linear(x2d, w_effT, b_eff)
    else:
        out2d = pallas_linear(x2d, kp["base_wT"], kp["base_b"])

    return out2d.reshape(B, S, H)


# Pure-JAX reference (literal PyTorch math) for the correctness check.
def reference_forward(params, x, step=0, *, self_modification=True, meta_lr=1e-6):
    mm = functools.partial(jnp.matmul, precision=lax.Precision.HIGHEST)
    base = mm(x, params["base_w"].T) + params["base_b"]
    if self_modification and step > 100:
        B, S, H = x.shape
        arch_code = mm(x.mean(axis=1), params["ag_w"].T) + params["ag_b"]
        new_w = (mm(arch_code, params["wm_w"].T) + params["wm_b"]).reshape(B, H, H)
        new_b = mm(arch_code, params["bm_w"].T) + params["bm_b"]
        mod_w = (1.0 - meta_lr) * params["base_w"] + meta_lr * new_w.mean(0)
        mod_b = (1.0 - meta_lr) * params["base_b"] + meta_lr * new_b.mean(0)
        mod = mm(x, mod_w.T) + mod_b
        return 0.8 * base + 0.2 * mod
    return base


if __name__ == "__main__":
    B, S, H = 2, 8, 32  # small shapes consistent with the module
    key = jax.random.PRNGKey(0)
    kx, kparam = jax.random.split(key)
    x = jax.random.normal(kx, (B, S, H), jnp.float32)

    params = init_params(kparam, H)               # PyTorch layout (reference)
    kernel_params = prepare_kernel_params(params)  # one-time kernel layout

    # Path 1: plain base transform (step <= 100)
    out_base = jax.block_until_ready(
        self_modifying_layer_forward(kernel_params, x, step=0))
    # Path 2: self-modification active (step > 100)
    out_mod = jax.block_until_ready(
        self_modifying_layer_forward(kernel_params, x, step=200))

    ref_base = reference_forward(params, x, step=0)
    ref_mod = reference_forward(params, x, step=200)
    assert jnp.allclose(out_base, ref_base, rtol=1e-3, atol=1e-3), \
        float(jnp.max(jnp.abs(out_base - ref_base)))
    assert jnp.allclose(out_mod, ref_mod, rtol=1e-3, atol=1e-3), \
        float(jnp.max(jnp.abs(out_mod - ref_mod)))

    print("KERNEL_OK")
</pallas_src>

<mosaic_0001>
module attributes {stable_mosaic.version = 11 : i64} {
  func.func @_linear_kernel(%arg0: i32, %arg1: memref<16x32xf32, #tpu.memory_space<vmem>>, %arg2: memref<32x32xf32, #tpu.memory_space<vmem>>, %arg3: memref<1x32xf32, #tpu.memory_space<vmem>>, %arg4: memref<16x32xf32, #tpu.memory_space<vmem>>) attributes {dimension_semantics = [#tpu.dimension_semantics<parallel>], iteration_bounds = array<i64: 1>, scalar_prefetch = 0 : i64, scratch_operands = 0 : i64, tpu.core_type = #tpu.core_type<tc>, window_params = [{transform_indices = @transform_0, window_bounds = array<i64: 16, 32>}, {pipeline_mode = #tpu.pipeline_mode<synchronous>, transform_indices = @transform_1, window_bounds = array<i64: 32, 32>}, {pipeline_mode = #tpu.pipeline_mode<synchronous>, transform_indices = @transform_2, window_bounds = array<i64: 1, 32>}, {transform_indices = @transform_3, window_bounds = array<i64: 16, 32>}]} {
    %c0 = arith.constant 0 : index
    %c0_0 = arith.constant 0 : index
    %0 = vector.load %arg1[%c0, %c0_0] : memref<16x32xf32, #tpu.memory_space<vmem>>, vector<16x32xf32>
    %c0_1 = arith.constant 0 : index
    %c0_2 = arith.constant 0 : index
    %1 = vector.load %arg2[%c0_1, %c0_2] : memref<32x32xf32, #tpu.memory_space<vmem>>, vector<32x32xf32>
    %cst = arith.constant dense<0.000000e+00> : vector<16x32xf32>
    %2 = tpu.matmul %0, %1, %cst {dimension_numbers = #tpu.dot_dimension_numbers<[1], [0], [0], [1], [0, 0, 1, 1], [], []>} : vector<16x32xf32>, vector<32x32xf32>, vector<16x32xf32> -> vector<16x32xf32>
    %c0_3 = arith.constant 0 : index
    %c0_4 = arith.constant 0 : index
    %3 = vector.load %arg3[%c0_3, %c0_4] : memref<1x32xf32, #tpu.memory_space<vmem>>, vector<1x32xf32>
    %4 = vector.broadcast %3 : vector<1x32xf32> to vector<16x32xf32>
    %5 = arith.addf %2, %4 : vector<16x32xf32>
    %c0_5 = arith.constant 0 : index
    %c0_6 = arith.constant 0 : index
    %6 = vector.load %arg4[%c0_5, %c0_6] : memref<16x32xf32, #tpu.memory_space<vmem>>, vector<16x32xf32>
    tpu.vector_store %arg4[%c0_5, %c0_6], %5 {strides = array<i32>} : memref<16x32xf32, #tpu.memory_space<vmem>>, vector<16x32xf32>,
    return
  }
  func.func @transform_0(%arg0: i32) -> (i32, i32) {
    %c0_i32 = arith.constant 0 : i32
    %c0_i32_0 = arith.constant 0 : i32
    return %arg0, %c0_i32 : i32, i32
  }
  func.func @transform_1(%arg0: i32) -> (i32, i32) {
    %c0_i32 = arith.constant 0 : i32
    %c0_i32_0 = arith.constant 0 : i32
    %c0_i32_1 = arith.constant 0 : i32
    return %c0_i32, %c0_i32_0 : i32, i32
  }
  func.func @transform_2(%arg0: i32) -> (i32, i32) {
    %c0_i32 = arith.constant 0 : i32
    %c0_i32_0 = arith.constant 0 : i32
    %c0_i32_1 = arith.constant 0 : i32
    return %c0_i32, %c0_i32_0 : i32, i32
  }
  func.func @transform_3(%arg0: i32) -> (i32, i32) {
    %c0_i32 = arith.constant 0 : i32
    %c0_i32_0 = arith.constant 0 : i32
    return %arg0, %c0_i32 : i32, i32
  }
}

</mosaic_0001>

<bundles_post_ra>
// kernel: tpu_custom_call.1
= control target key start
LH: loop header
LB: loop body
LE: loop exit
PB: predicated region body
PF: predicated region fallthrough
CT: control target
= control target key end

     0   :  { %8 = vsyncpa [#allocation3], 0  ;;  %s249_s0 = inlined_call_operand.hbm [shape: f32[16,32], index: 0, kind: input, shape index: {}]   ;;  %s250_s1 = inlined_call_operand.hbm [shape: f32[32,32], index: 1, kind: input, shape index: {}]   ;;  %s251_s2 = inlined_call_operand.vmem [shape: f32[1,32], index: 2, kind: input, shape index: {}]   ;;  %s252_s3 = inlined_call_operand.hbm [shape: f32[16,32], index: 3, kind: output, shape index: {}]  }
   0x1   :  { %9 = vsyncpa [#allocation6], 0 }
   0x2   :  { %10 = vsyncpa [#allocation4], 0  ;;  %s15_s14 = sshll.u32 %s249_s0, 4  ;;  %s199_s15 = smov [#allocation2]   ;;  %s16_s14 = int_to_ptr.hbm [resolvable:$true] %s15_s14 }
   0x3   :  { %s17_s16 = sshll.u32 %s199_s15, 4  ;;  %s28_s19 = sshll.u32 %s250_s1, 4  ;;  %s18_s16 = int_to_ptr.vmem [resolvable:$true] %s17_s16  ;;  %s29_s19 = int_to_ptr.hbm [resolvable:$true] %s28_s19 }
   0x4   :  { %s200_s20 = smov 128   ;;  %s201_s21 = smov 8  }
   0x5   :  { %23 = dma.hbm_to_vmem [thread:$0]  %s16_s14, 256, %s18_s16, [#allocation3], %s200_s20, %s200_s20, %s201_s21  }
   0x6   :  { %s202_s22 = smov [#allocation5]  }
   0x7   :  { %s30_s23 = sshll.u32 %s202_s22, 4  ;;  %s31_s23 = int_to_ptr.vmem [resolvable:$true] %s30_s23 }
   0x8   :  { %36 = dma.hbm_to_vmem [thread:$0]  %s29_s19, 512, %s31_s23, [#allocation6], %s200_s20, %s200_s20, %s201_s21  }
   0x9   :  { %193 = dma.done.wait [#allocation3], 256  }
   0xa   :  { %194 = vsyncadd [#allocation3], 4294967040 }
   0xb   :  { %195 = dma.done.wait [#allocation6], 512  }
   0xc   :  { %196 = vsyncadd [#allocation6], 4294966784  ;;  %v52_v0 = vld [vmem:[#allocation5 + $0x18] sm:$0xff]  ;;  %v51_v1 = vld [vmem:[#allocation5 + $0x10] sm:$0xff]  ;;  %vm57_vm0 = vcmask 261120   ;;  %s203_s24 = smov [#allocation7]  }
   0xd   :  { %76 = vmatpush.msra.mxu0 %v52_v0  ;;  %111 = vmatpush.msra.mxu1 %v52_v0  ;;  %v50_v2 = vld [vmem:[#allocation5 + $0x8] sm:$0xff]  ;;  %v49_v3 = vld [vmem:[#allocation5] sm:$0xff]  ;;  %v47_v4 = vld [vmem:[#allocation2] sm:$0xff]  ;;  %s93_s25 = sshll.u32 %s203_s24, 4  ;;  %s95_s28 = sshll.u32 %s252_s3, 4  ;;  %s94_s25 = int_to_ptr.vmem [resolvable:$true] %s93_s25  ;;  %s96_s28 = int_to_ptr.hbm [resolvable:$true] %s95_s28 }
   0xe   :  { %v48_v5 = vld [vmem:[#allocation2 + $0x8] sm:$0xff]  ;;  %v120_v6 = vld [vmem:[%s251_s2] ss:$0 sm:$0xff] }
   0xf   :  { %77 = vmatpush.msra.mxu0 %v51_v1  ;;  %112 = vmatpush.msra.mxu1 %v51_v1 }
  0x11   :  { %78 = vmatpush.msra.mxu0 %v50_v2  ;;  %113 = vmatpush.msra.mxu1 %v50_v2 }
  0x13   :  { %79 = vmatpush.msra.mxu0 %v49_v3  ;;  %114 = vmatpush.msra.mxu1 %v49_v3 }
  0x14   :  { %109 = vmatmul.msk.f32.vlgmr.msra.gmra.mxu0 %vm57_vm0, %v47_v4  ;;  %110 = vmatmul.msk.f32.vlgmr.msra.gmra.mxu1 %vm57_vm0, %v48_v5 }
  0x91   :  { %v81_v7 = vpop.f32.mrf.mxu0  ;;  %v84_v8 = vpop.f32.mrf.mxu1 }
  0x92   :  { %v82_v9 = vadd.f32 %v120_v6, %v81_v7  ;;  %v85_v10 = vadd.f32 %v120_v6, %v84_v8 }
  0x94   :  { %87 = vst.msk [vmem:[#allocation7] sm:$0xff] %vm57_vm0, %v82_v9 }
  0x95   :  { %88 = vst.msk [vmem:[#allocation7 + $0x8] sm:$0xff] %vm57_vm0, %v85_v10 }
  0x96   :  { %101 = dma.vmem_to_hbm [thread:$0]  %s94_s25, 256, %s96_s28, [#allocation4], %s200_s20, %s200_s20, %s201_s21  }
  0x97   :  { %197 = dma.done.wait [#allocation4], 256  }
  0x98   :  { %198 = vsyncadd [#allocation4], 4294967040 }
  0x99   :  { %106 = vsyncpa [#allocation3], 1 }
  0x9a   :  { %107 = vsyncpa [#allocation6], 1 }
  0x9b   :  { %108 = vsyncpa [#allocation4], 1 }

</bundles_post_ra>
